<compile_context>
chip_gen: v5e
topology: v5e:2x2
jax: 0.10.0
libtpu: 0.0.40
codegen_flags: <defaults>
</compile_context>

<pallas_src>
import functools

import jax
import jax.numpy as jnp
import numpy as np
from jax import lax
from jax.experimental import pallas as pl
from jax.experimental.pallas import tpu as pltpu


# ----------------------------- Pallas kernel ---------------------------------

def _multitask_head_kernel(task_ids_ref,   # SMEM (B,) int32, scalar-prefetch
                           n_labels_ref,   # SMEM (B,) int32, per-row label count
                           seq_ref,        # VMEM (1, S_BLK, H)       bf16
                           w_ref,          # VMEM (T, H, MAX_OUT)     bf16 (resident)
                           out_ref):       # VMEM (1, S_BLK, MAX_OUT) f32
    b = pl.program_id(0)
    t = task_ids_ref[b]
    n_labels = n_labels_ref[b]

    # Select this row's head from the VMEM-resident stack (no per-step weight DMA;
    # the dynamic first-axis index is a plain VMEM read of the (H, MAX_OUT) slab).
    w = w_ref[t]                                        # (H, MAX_OUT) bf16

    # classifier: Linear(hidden_size, num_labels, bias=None) -> MXU, f32 accumulate.
    logits = jnp.dot(seq_ref[0], w, preferred_element_type=jnp.float32)

    # nn.functional.pad(task_logits, (0, max_out - num_labels), 'constant', -100)
    col = lax.broadcasted_iota(jnp.int32, logits.shape, 1)
    out_ref[0] = jnp.where(col < n_labels, logits, jnp.float32(-100.0))


def _pick_s_block(S: int, H: int, max_out: int, max_rows: int = 512) -> int:
    """Largest S-chunk <= max_rows that tiles S and keeps the pipelined tiles small.

    VMEM footprint per step (ignoring the resident weight stack, which is fixed):
    2 activation buffers (bf16) + 2 output buffers (f32); keep it under ~8 MiB.
    """
    budget = 8 * 1024 * 1024
    per_row = 2 * (H * 2) + 2 * (max_out * 4)           # bytes / sequence row
    cap = max(8, min(max_rows, budget // max(per_row, 1)))
    cap -= cap % 8                                       # keep a multiple of 8
    if S <= cap:
        return S
    for cand in range(cap, 7, -8):                       # multiples of 8, descending
        if S % cand == 0:
            return cand
    return S                                             # fallback: full S


def multitask_heads(sequence_output, w_stack, task_ids, num_labels):
    """sequence_output: (B, S, H) f32; w_stack: (T, H, MAX_OUT) f32;
       task_ids: (B,) int32; num_labels: (T,) int32 -> logits (B, S, MAX_OUT) f32."""
    B, S, H = sequence_output.shape
    T, _, MAX_OUT = w_stack.shape

    s_block = _pick_s_block(S, H, MAX_OUT)
    n_s = S // s_block

    # bf16 operands for the MXU; accumulation stays f32 inside the kernel.
    seq_bf16 = sequence_output.astype(jnp.bfloat16)
    w_bf16 = w_stack.astype(jnp.bfloat16)

    # Precompute per-row label counts: avoids a dependent SMEM load in-kernel.
    task_ids = task_ids.astype(jnp.int32)
    n_labels_row = num_labels.astype(jnp.int32)[task_ids]

    grid_spec = pltpu.PrefetchScalarGridSpec(
        num_scalar_prefetch=2,
        grid=(B, n_s),
        in_specs=[
            # One (batch-row, S-chunk) activation tile per grid step.
            pl.BlockSpec((1, s_block, H), lambda b, s, tid, nl: (b, s, 0)),
            # Whole weight stack, constant block index -> fetched once, VMEM-resident.
            pl.BlockSpec((T, H, MAX_OUT), lambda b, s, tid, nl: (0, 0, 0)),
        ],
        out_specs=pl.BlockSpec((1, s_block, MAX_OUT), lambda b, s, tid, nl: (b, s, 0)),
    )

    cost = pl.CostEstimate(
        flops=2 * B * S * H * MAX_OUT,
        transcendentals=0,
        bytes_accessed=(B * S * H * 2) + (T * H * MAX_OUT * 2) + (B * S * MAX_OUT * 4),
    )

    return pl.pallas_call(
        _multitask_head_kernel,
        out_shape=jax.ShapeDtypeStruct((B, S, MAX_OUT), jnp.float32),
        grid_spec=grid_spec,
        compiler_params=pltpu.CompilerParams(
            dimension_semantics=("parallel", "parallel")),
        cost_estimate=cost,
    )(task_ids, n_labels_row, seq_bf16, w_bf16)


# --------------------------- synthetic encoder (glue) ------------------------

def synthetic_encoder(input_ids, embed_table, w_enc, w_pool):
    """Deterministic stand-in for AutoModel: returns (sequence_output, pooled_output)."""
    emb = embed_table[input_ids]                         # (B, S, H)
    seq = jnp.tanh(jnp.einsum("bsh,hk->bsk", emb, w_enc))
    pooled = jnp.tanh(seq[:, 0, :] @ w_pool)             # (B, H)
    return seq, pooled


# ------------------------------- full forward --------------------------------

def multitask_model_forward(input_ids, task_ids, params, num_labels, max_output_layer_size):
    seq, pooled = synthetic_encoder(
        input_ids, params["embed"], params["w_enc"], params["w_pool"])
    logits = multitask_heads(seq, params["w_heads"], task_ids, num_labels)
    # PyTorch returns (logits, outputs[2:]); synthetic encoder has no extra outputs.
    return logits, ()


# ----------------------------------- main -------------------------------------

if __name__ == "__main__":
    # Small shapes consistent with the module.
    B, S, H = 4, 16, 32          # batch, seq len, encoder hidden size
    VOCAB = 50
    LABEL_COUNTS = [5, 3]        # len(label_names[task]) per task
    T = len(LABEL_COUNTS)
    MAX_OUT = 128                # max_output_layer_size

    key = jax.random.PRNGKey(0)
    k_emb, k_enc, k_pool, k_heads, k_ids = jax.random.split(key, 5)

    # Synthetic encoder params (scaled so logits are O(0.1); head init matches
    # TokenClassificationHead._init_weights: weight ~ N(0, 0.02), no bias).
    embed = jax.random.normal(k_emb, (VOCAB, H), jnp.float32)
    w_enc = jax.random.normal(k_enc, (H, H), jnp.float32) / jnp.sqrt(H)
    w_pool = jax.random.normal(k_pool, (H, H), jnp.float32) / jnp.sqrt(H)

    # Stack per-task classifier weights into (T, H, MAX_OUT), zero-padded columns.
    w_heads = np.zeros((T, H, MAX_OUT), np.float32)
    head_keys = jax.random.split(k_heads, T)
    for t, (nl, hk) in enumerate(zip(LABEL_COUNTS, head_keys)):
        w_heads[t, :, :nl] = np.asarray(
            0.02 * jax.random.normal(hk, (H, nl), jnp.float32))
    w_heads = jnp.asarray(w_heads)

    params = {"embed": embed, "w_enc": w_enc, "w_pool": w_pool, "w_heads": w_heads}

    input_ids = jax.random.randint(k_ids, (B, S), 0, VOCAB, dtype=jnp.int32)
    task_ids = jnp.array([0, 1, 0, 1], dtype=jnp.int32)          # one head per row
    num_labels = jnp.array(LABEL_COUNTS, dtype=jnp.int32)

    logits, _extra = jax.jit(
        functools.partial(multitask_model_forward,
                          num_labels=num_labels,
                          max_output_layer_size=MAX_OUT)
    )(input_ids, task_ids, params)
    logits = jax.block_until_ready(logits)

    # Pure-JAX reference of the head path for a correctness check (f32 reference;
    # tolerance loosened for the bf16 matmul operands).
    seq_ref, _ = synthetic_encoder(input_ids, embed, w_enc, w_pool)
    ref = np.full((B, S, MAX_OUT), -100.0, np.float32)
    for b in range(B):
        t = int(task_ids[b])
        nl = LABEL_COUNTS[t]
        ref[b, :, :nl] = np.asarray(seq_ref[b] @ w_heads[t, :, :nl])
    np.testing.assert_allclose(np.asarray(logits), ref, rtol=2e-2, atol=2e-3)

    assert logits.shape == (B, S, MAX_OUT) and logits.dtype == jnp.float32
    print("KERNEL_OK")
</pallas_src>

<mosaic_0001>
module attributes {stable_mosaic.version = 11 : i64} {
  func.func @_multitask_head_kernel(%arg0: i32, %arg1: i32, %arg2: memref<4xi32, #tpu.memory_space<smem>>, %arg3: memref<4xi32, #tpu.memory_space<smem>>, %arg4: memref<1x16x32xbf16, #tpu.memory_space<vmem>>, %arg5: memref<2x32x128xbf16, #tpu.memory_space<vmem>>, %arg6: memref<1x16x128xf32, #tpu.memory_space<vmem>>) attributes {dimension_semantics = [#tpu.dimension_semantics<parallel>, #tpu.dimension_semantics<parallel>], iteration_bounds = array<i64: 4, 1>, scalar_prefetch = 2 : i64, scratch_operands = 0 : i64, tpu.core_type = #tpu.core_type<tc>, window_params = [{transform_indices = @transform_0, window_bounds = array<i64: 1, 16, 32>}, {pipeline_mode = #tpu.pipeline_mode<synchronous>, transform_indices = @transform_1, window_bounds = array<i64: 2, 32, 128>}, {transform_indices = @transform_2, window_bounds = array<i64: 1, 16, 128>}]} {
    %0 = arith.index_cast %arg0 : i32 to index
    %1 = memref.load %arg2[%0] : memref<4xi32, #tpu.memory_space<smem>>
    %2 = arith.index_cast %arg0 : i32 to index
    %3 = memref.load %arg3[%2] : memref<4xi32, #tpu.memory_space<smem>>
    %4 = arith.index_cast %1 : i32 to index
    %c0 = arith.constant 0 : index
    %c0_0 = arith.constant 0 : index
    %5 = vector.load %arg5[%4, %c0, %c0_0] : memref<2x32x128xbf16, #tpu.memory_space<vmem>>, vector<1x32x128xbf16>
    %6 = vector.shape_cast %5 : vector<1x32x128xbf16> to vector<32x128xbf16>
    %c0_1 = arith.constant 0 : index
    %c0_2 = arith.constant 0 : index
    %c0_3 = arith.constant 0 : index
    %7 = vector.load %arg4[%c0_1, %c0_2, %c0_3] : memref<1x16x32xbf16, #tpu.memory_space<vmem>>, vector<1x16x32xbf16>
    %8 = vector.shape_cast %7 : vector<1x16x32xbf16> to vector<16x32xbf16>
    %cst = arith.constant dense<0.000000e+00> : vector<16x128xf32>
    %9 = tpu.matmul %8, %6, %cst {dimension_numbers = #tpu.dot_dimension_numbers<[1], [0], [0], [1], [0, 0, 1, 1], [], []>} : vector<16x32xbf16>, vector<32x128xbf16>, vector<16x128xf32> -> vector<16x128xf32>
    %10 = tpu.iota {dimensions = array<i32: 1>} : vector<16x128xi32>
    %11 = vector.broadcast %3 : i32 to vector<16x128xi32>
    %12 = arith.cmpi slt, %10, %11 : vector<16x128xi32>
    %cst_4 = arith.constant -1.000000e+02 : f32
    %13 = vector.broadcast %cst_4 : f32 to vector<16x128xf32>
    %14 = arith.select %12, %9, %13 : vector<16x128xi1>, vector<16x128xf32>
    %c0_5 = arith.constant 0 : index
    %c0_6 = arith.constant 0 : index
    %c0_7 = arith.constant 0 : index
    %15 = vector.load %arg6[%c0_5, %c0_6, %c0_7] : memref<1x16x128xf32, #tpu.memory_space<vmem>>, vector<1x16x128xf32>
    %16 = vector.shape_cast %15 : vector<1x16x128xf32> to vector<16x128xf32>
    %17 = vector.shape_cast %14 : vector<16x128xf32> to vector<1x16x128xf32>
    tpu.vector_store %arg6[%c0_5, %c0_6, %c0_7], %17 {strides = array<i32>} : memref<1x16x128xf32, #tpu.memory_space<vmem>>, vector<1x16x128xf32>,
    return
  }
  func.func @transform_0(%arg0: i32, %arg1: i32, %arg2: memref<4xi32, #tpu.memory_space<smem>>, %arg3: memref<4xi32, #tpu.memory_space<smem>>) -> (i32, i32, i32) {
    %c0_i32 = arith.constant 0 : i32
    %c0_i32_0 = arith.constant 0 : i32
    return %arg0, %arg1, %c0_i32 : i32, i32, i32
  }
  func.func @transform_1(%arg0: i32, %arg1: i32, %arg2: memref<4xi32, #tpu.memory_space<smem>>, %arg3: memref<4xi32, #tpu.memory_space<smem>>) -> (i32, i32, i32) {
    %c0_i32 = arith.constant 0 : i32
    %c0_i32_0 = arith.constant 0 : i32
    %c0_i32_1 = arith.constant 0 : i32
    %c0_i32_2 = arith.constant 0 : i32
    return %c0_i32, %c0_i32_0, %c0_i32_1 : i32, i32, i32
  }
  func.func @transform_2(%arg0: i32, %arg1: i32, %arg2: memref<4xi32, #tpu.memory_space<smem>>, %arg3: memref<4xi32, #tpu.memory_space<smem>>) -> (i32, i32, i32) {
    %c0_i32 = arith.constant 0 : i32
    %c0_i32_0 = arith.constant 0 : i32
    return %arg0, %arg1, %c0_i32 : i32, i32, i32
  }
}

</mosaic_0001>

<bundles_post_ra>
// kernel: multitask_model_forward.1
= control target key start
LH: loop header
LB: loop body
LE: loop exit
PB: predicated region body
PF: predicated region fallthrough
CT: control target
= control target key end

     0   :  { %s541_s21 = smov [#allocation3]   ;;  %s542_s22 = smov [#allocation4]   ;;  %s678_s0 = inlined_call_operand.vmem [shape: s32[4], index: 0, kind: input, shape index: {}]   ;;  %s679_s2 = inlined_call_operand.vmem [shape: bf16[4,16,32], index: 2, kind: input, shape index: {}]   ;;  %s680_s3 = inlined_call_operand.vmem [shape: bf16[2,32,128], index: 3, kind: input, shape index: {}]   ;;  %s681_s4 = inlined_call_operand.hbm [shape: f32[4,16,128], index: 4, kind: output, shape index: {}]   ;;  %s682_s1 = inlined_call_operand.vmem [shape: s32[4], index: 1, kind: input, shape index: {}]  }
   0x1   :  { %s10_s17 = sshll.u32 %s678_s0, 4  ;;  %s15_s20 = sshll.u32 %s682_s1, 4  ;;  %s11_s17 = int_to_ptr.vmem [resolvable:$true] %s10_s17  ;;  %s16_s20 = int_to_ptr.vmem [resolvable:$true] %s15_s20 }
   0x2   :  { %13 = dma.vmem_to_smem %s11_s17, 16, %s541_s21, [#allocation2] }
   0x3   :  { %18 = dma.vmem_to_smem %s16_s20, 16, %s542_s22, [#allocation2] }
   0x4   :  { %511 = dma.done.wait [#allocation2], 32 }
   0x5   :  { %512 = vsyncadd [#allocation2], 4294967264 }
   0x6   :  { %21 = sfence }
   0x7   :  { %22 = vsyncpa [#allocation6], 0 }
   0x8   :  { %24 = vsyncpa [#allocation6 + $0x1], 0  ;;  %s576_s23 = smov 0   ;;  %s578_s24 = smov 0  }
   0x9   :  { %s580_s0 = smov 0   ;;  %s582_s25 = smov 0  }
   0xa   :  { %s584_s1 = smov 0   ;;  %s586_s26 = smov 0  }
   0xb LB: > { %s342_s27 = sadd.s32 4294967295, %s539_s26   ;;  %s343_s28 = sadd.s32 4294967294, %s539_s26   ;;  %s539_s26 = sphi %s586_s26, %s30_s26   ;;  %s535_s1 = sphi %s584_s1, %s689_s1   ;;  %s531_s25 = sphi %s582_s25, %s688_s25   ;;  %s527_s0 = sphi %s580_s0, %s687_s0   ;;  %s523_s24 = sphi %s578_s24, %s686_s24   ;;  %s519_s23 = sphi %s576_s23, %s685_s23  }
   0xc   : > { %s42_s29 = sadd.s32 1, %s535_s1  ;;  %s100_s30 = sadd.s32 1, %s527_s0 }
   0xd   : > { %p44_p0 = scmp.ge.s32.totalorder %s42_s29, 4  ;;  %p110_p1 = scmp.ne.s32.totalorder %s527_s0, %s523_s24 }
   0xe   : > { %p111_p2 = scmp.eq.s32.totalorder %s342_s27, 3  ;;  %p116_p3 = scmp.ne.s32.totalorder %s523_s24, %s519_s23 }
   0xf   : > { %s691_s29 = smov (%p44_p0, %s42_s29), 0  ;;  %p117_p5 = scmp.eq.s32.totalorder %s343_s28, 3 }
  0x10   : > { %p616_p4 = por %p111_p2, %p110_p1  ;;  %s95_s6 = ssub.s32 %s535_s1, %s691_s29 }
  0x11   : > { %p346_p6 = scmp.ge.s32.totalorder %s539_s26, 1  ;;  %p98_p7 = scmp.eq.s32.totalorder %s95_s6, 0 }
  0x12   : > { %p623_p8 = por %p117_p5, %p116_p3  ;;  %p151_p9 = scmp.lt.s32.totalorder %s539_s26, 5 }
  0x13   : > { %s629_s8 = scalar_select %p98_p7, %s527_s0, %s100_s30  }
  0x14   : > { %p152_p10 = pnand %p346_p6, %p151_p9 }
  0x15   : > { %s189_s9 = sld [smem:[#allocation3 + %s531_s25]] (!%p152_p10)  ;;  %p178_p11 = scmp.lt.s32.totalorder (!%p152_p10), %s531_s25, 3 }
  0x16   : > { %155 = sbr.rel (%p152_p10) target bundleno = 177 (0xb1), region = 28  ;;  %s190_s19 = sld [smem:[#allocation4 + %s531_s25]] (!%p152_p10) }
  0x17   : > { %s174_s20 = sand.u32 (!%p152_p10), 1, %s523_s24   ;;  %s375_s22 = sshll.u32 (!%p152_p10), %s531_s25, 4 }
  0x18   : > { %s347_s21 = sshll.u32 (!%p152_p10), %s174_s20, 4  ;;  %s257_s30 = scalar_lea.hbm (!%p152_p10), %s681_s4, %s375_s22 }
  0x19   : > { %s176_s6 = scalar_lea.vmem (!%p152_p10), [#allocation5], %s347_s21 }
  0x1b   : > { %s179_s10 = scalar_select %p178_p11, %s531_s25, 3  ;;  %vm217_vm0 = vcmask 261120   ;;  %v235_v3 = vlaneseq }
  0x1c   : > { %s371_s11 = sshll.u32 %s189_s9, 4  ;;  %v237_v5 = vstv %s190_s19  ;;  %s258_s9 = sshll.u32 %s176_s6, 4  ;;  %s259_s9 = int_to_ptr.vmem [resolvable:$true] %s258_s9 }
  0x1d   : > { %s193_s14 = scalar_lea.vmem %s680_s3, %s371_s11  ;;  %s370_s15 = sshll.u32 %s179_s10, 3  ;;  %v236_v4 = vand.u32 127, %v235_v3 }
  0x1e   : > { %v373_v0 = vld [vmem:[%s193_s14 + $0x8] sm:$0xff]  ;;  %v372_v1 = vld [vmem:[%s193_s14] sm:$0xff]  ;;  %s185_s18 = scalar_lea.vmem %s679_s2, %s370_s15  ;;  %s260_s10 = sshll.u32 %s257_s30, 4  ;;  %s261_s10 = int_to_ptr.hbm [resolvable:$true] %s260_s10 }
  0x1f   : > { %227 = vmatpush.bf16.msra.mxu0 %v373_v0  ;;  %v374_v2 = vld [vmem:[%s185_s18] sm:$0xff]  ;;  %vm238_vm1 = vcmp.lt.s32.totalorder %v236_v4, %v237_v5  ;;  %s244_s11 = scalar_lea.sflag [#allocation6], %s174_s20  ;;  %s473_s12 = sshra.s32 %s261_s10, 4  ;;  %s474_s12 = int_to_ptr.hbm [resolvable:$true] %s473_s12 }
  0x20   : > { %s475_s25 = scalar_lea.hbm %s474_s12, 16  ;;  %s479_s15 = scalar_lea.hbm %s681_s4, 64 }
  0x21   : > { %p476_p12 = scmp.ne.s32.totalorder %s474_s12, %s475_s25  ;;  %p480_p1 = scmp.lt.s32.totalorder %s474_s12, %s681_s4 }
  0x22   : > { %p481_p2 = scmp.lt.s32.totalorder %s479_s15, %s475_s25 }
  0x23   : > { %228 = vmatpush.bf16.msra.mxu0 %v372_v1  ;;  %p477_p13 = pnand %p476_p12, %p616_p4 }
  0x24   : > { %p482_p3 = por %p481_p2, %p480_p1 }
  0x25   : > { %p478_p0 = pneg %p477_p13 }
  0x26   : > { %364 = vmatmul.msk.bf16.vlgmr.msra.gmra.mxu0 %vm217_vm0, %v374_v2 }
  0x27   : > { %p483_p5 = pnand %p482_p3, %p478_p0 }
  0xa3   : > { %v230_v6 = vpop.f32.mrf.mxu0 }
  0xa4   : > { %v239_v7 = vsel %vm238_vm1, %v230_v6, -100.0 }
  0xa5   : > { %241 = vst [vmem:[%s176_s6] sm:$0xff] %v239_v7 }
  0xab   : > { %v232_v8 = vpop.f32.mrf.mxu0 }
  0xac   : > { %v240_v9 = vsel %vm238_vm1, %v232_v8, -100.0 }
  0xad   : > { %242 = vst [vmem:[%s176_s6 + $0x8] sm:$0xff] %v240_v9 }
  0xae   : > { %486 = shalt.err (!%p483_p5)
}
  0xaf   : > { %s543_s18 = smov 128   ;;  %s544_s19 = smov 8  }
  0xb0   : > { %376 = dma.vmem_to_hbm [thread:$0]  (%p616_p4), %s259_s9, 256, %s261_s10, %s244_s11, %s543_s18, %s543_s18, %s544_s19  }
  0xb1 PF: > { %p382_p6 = scmp.ge.s32.totalorder %s539_s26, 2  ;;  %s275_s20 = sand.u32 1, %s519_s23  }
  0xb2   : > { %s276_s21 = scalar_lea.sflag [#allocation6], %s275_s20 }
  0xb3   : > { %p379_p7 = pnand %p382_p6, %p623_p8 }
  0xb5   : > { %p380_p9 = pneg %p379_p7 }
  0xb7   : > { %514 = dma.done.wait (%p380_p9), %s276_s21, 256  }
  0xb8   : > { %516 = vsyncadd (%p380_p9), %s276_s21, 4294967040  ;;  %s30_s26 = sadd.s32 1, %s539_s26   ;;  %s685_s23 = smov %s523_s24 }
  0xb9   : > { %p27_p10 = scmp.ge.s32.totalorder %s30_s26, 6   ;;  %s686_s24 = smov %s527_s0 }
  0xba   : > { %s687_s0 = smov %s629_s8  ;;  %s688_s25 = smov %s535_s1 }
  0xbb   : > { %s689_s1 = smov %s691_s29  ;;  %29 = sbr.rel (!%p27_p10) target bundleno = 11 (0xb), region = 64 }
  0xc0   :  { %282 = vsyncpa [#allocation6], 1 }
  0xc1   :  { %284 = vsyncpa [#allocation6 + $0x1], 1 }

</bundles_post_ra>
